<compile_context>
chip_gen: v5e
topology: v5e:2x2
jax: 0.10.0
libtpu: 0.0.40
codegen_flags: <defaults>
</compile_context>

<pallas_src>
import math

import jax
import jax.numpy as jnp
import numpy as np
from jax.experimental import pallas as pl
from jax.experimental.pallas import tpu as pltpu


def _dwt1d_kernel(filt_ref, taps_ref, out_ref):
    """One (batch b, channel-tile c, length-tile j) grid step.

    filt_ref: SMEM (2, K) f32; row 0 = dec_lo taps, row 1 = dec_hi taps.
    taps_ref: VMEM (K, 1, tile_c, tile_n); taps_ref[k] holds x[b, c, 2*t + k].
    out_ref:  VMEM (1, 2, tile_c, tile_n); [:, 0] = low-pass, [:, 1] = high-pass.
    """
    K = taps_ref.shape[0]
    x0 = taps_ref[0, 0, :, :].astype(jnp.float32)
    lo = filt_ref[0, 0] * x0
    hi = filt_ref[1, 0] * x0
    for k in range(1, K):            # K tiny & static -> fully unrolled VPU FMAs
        xk = taps_ref[k, 0, :, :].astype(jnp.float32)
        lo = lo + filt_ref[0, k] * xk
        hi = hi + filt_ref[1, k] * xk
    out_ref[0, 0, :, :] = lo.astype(out_ref.dtype)
    out_ref[0, 1, :, :] = hi.astype(out_ref.dtype)


def _round_up(n, m):
    return ((n + m - 1) // m) * m


# Double-buffered working-set budget: stays under v5e's 16 MiB default scoped
# VMEM and well under v7x's 64 MiB physical VMEM without touching vmem_limit.
_VMEM_BUDGET = 12 * 1024 * 1024


def _pick_tile_c(C):
    """Exact divisor of C (no row padding): full C if small, else a /8 divisor."""
    if C <= 256:
        return C
    for d in range(256, 7, -1):
        if C % d == 0 and d % 8 == 0:
            return d
    return C                     # fall back to full-channel blocks


def _pick_tile_n(L_out, tile_c, K, in_item, out_item):
    """Lane tile (multiple of 128 or the full length) + padded output length."""
    per_col = 2 * tile_c * (K * in_item + 2 * out_item)   # double-buffered B/column
    cap = max(_VMEM_BUDGET // per_col, 128)
    cap = min((cap // 128) * 128, 1024)
    cap = max(cap, 128)
    if L_out % 128 == 0:
        for d in range(cap, 127, -128):          # largest 128-multiple dividing L_out
            if L_out % d == 0:
                return d, L_out
        return 128, L_out
    if L_out <= cap:
        return L_out, L_out                      # single exact lane tile, no padding
    n_dim = _round_up(L_out, 128)
    for d in range(cap, 127, -128):
        if n_dim % d == 0:
            return d, n_dim
    return 128, n_dim


def dwt_1d(x, dec_lo, dec_hi):
    """Pallas-TPU equivalent of DWT_Function.forward (forward pass only).

    x: (B, C, L); dec_lo / dec_hi: K filter taps each (any shape, e.g. (1,1,K)),
    already reversed as done in DWT_1D.__init__.  Returns (B, 2*C, L_out).
    """
    B, C, L = x.shape
    lo_f = jnp.asarray(dec_lo, jnp.float32).reshape(-1)
    hi_f = jnp.asarray(dec_hi, jnp.float32).reshape(-1)
    K = int(lo_f.shape[0])
    if int(hi_f.shape[0]) != K:
        raise ValueError("dec_lo and dec_hi must have the same number of taps")
    if B < 1 or C < 1 or K < 1 or L < K:
        raise ValueError(f"degenerate DWT_1D shapes: x={x.shape}, K={K}")
    L_out = (L - K) // 2 + 1

    in_item = jnp.dtype(x.dtype).itemsize
    out_item = in_item
    tile_c = _pick_tile_c(C)
    tile_n, n_dim = _pick_tile_n(L_out, tile_c, K, in_item, out_item)
    pad_n = n_dim - L_out

    # Stride-2 "tap" streams: taps[k, b, c, t] = x[b, c, 2*t + k].  Single fused
    # XLA copy (deinterleave + optional zero pad); the only extra HBM pass left.
    taps = jnp.stack([x[:, :, k:k + 2 * L_out:2] for k in range(K)], axis=0)
    if pad_n:
        taps = jnp.pad(taps, ((0, 0), (0, 0), (0, 0), (0, pad_n)))

    filt = jnp.stack([lo_f, hi_f], axis=0)        # (2, K) f32 scalars -> SMEM

    grid = (B, C // tile_c, n_dim // tile_n)
    cost = pl.CostEstimate(
        flops=4 * K * B * C * L_out,
        transcendentals=0,
        bytes_accessed=(K * in_item + 2 * out_item) * B * C * n_dim,
    )

    out4 = pl.pallas_call(
        _dwt1d_kernel,
        out_shape=jax.ShapeDtypeStruct((B, 2, C, n_dim), x.dtype),
        grid=grid,
        in_specs=[
            pl.BlockSpec(memory_space=pltpu.MemorySpace.SMEM),           # (2,K) filter
            pl.BlockSpec((K, 1, tile_c, tile_n), lambda b, c, j: (0, b, c, j)),
        ],
        out_specs=pl.BlockSpec((1, 2, tile_c, tile_n), lambda b, c, j: (b, 0, c, j)),
        compiler_params=pltpu.CompilerParams(
            dimension_semantics=("parallel", "parallel", "parallel")),
        cost_estimate=cost,
    )(filt, taps)

    # (B, 2, C, n) -> (B, 2C, n) is a free row-major reshape == channel concat.
    out = out4.reshape(B, 2 * C, n_dim)
    if pad_n:
        out = out[:, :, :L_out]
    return out


def _reference_dwt1d(x, dec_lo, dec_hi):
    """Pure-numpy reference of the depthwise stride-2 conv + channel concat."""
    xn = np.asarray(x, np.float64)
    lo = np.asarray(dec_lo, np.float64).reshape(-1)
    hi = np.asarray(dec_hi, np.float64).reshape(-1)
    K = lo.shape[0]
    B, C, L = xn.shape
    L_out = (L - K) // 2 + 1
    ref_lo = np.zeros((B, C, L_out))
    ref_hi = np.zeros((B, C, L_out))
    for t in range(L_out):
        seg = xn[:, :, 2 * t:2 * t + K]
        ref_lo[:, :, t] = (seg * lo).sum(-1)
        ref_hi[:, :, t] = (seg * hi).sum(-1)
    return np.concatenate([ref_lo, ref_hi], axis=1)


if __name__ == "__main__":
    # Deterministic parameters: Haar ('db1') coefficients, reversed exactly as in
    # DWT_1D.__init__ (w.dec_lo[::-1], w.dec_hi[::-1]).  pywt 'haar':
    # dec_lo = [s, s], dec_hi = [-s, s] with s = 1/sqrt(2).
    s = 1.0 / math.sqrt(2.0)
    dec_lo = jnp.array([[[s, s]]], dtype=jnp.float32)      # (1, 1, 2)
    dec_hi = jnp.array([[[s, -s]]], dtype=jnp.float32)     # reversed [-s, s]

    key = jax.random.PRNGKey(0)

    # Small shape from the module spec (B=2, C=4, L=16): single exact lane tile.
    x_small = jax.random.normal(key, (2, 4, 16), dtype=jnp.float32)
    out_small = jax.block_until_ready(dwt_1d(x_small, dec_lo, dec_hi))
    assert out_small.shape == (2, 8, 8) and out_small.dtype == x_small.dtype
    np.testing.assert_allclose(np.asarray(out_small),
                               _reference_dwt1d(x_small, dec_lo, dec_hi),
                               rtol=1e-5, atol=1e-5)

    # Lane-aligned shape exercising the tiled, lane-dense path (L_out = 256).
    x_big = jax.random.normal(jax.random.PRNGKey(0), (2, 8, 512), dtype=jnp.float32)
    out_big = jax.block_until_ready(dwt_1d(x_big, dec_lo, dec_hi))
    assert out_big.shape == (2, 16, 256) and out_big.dtype == x_big.dtype
    np.testing.assert_allclose(np.asarray(out_big),
                               _reference_dwt1d(x_big, dec_lo, dec_hi),
                               rtol=1e-5, atol=1e-5)

    print("KERNEL_OK")
</pallas_src>

<mosaic_0001>
module attributes {stable_mosaic.version = 11 : i64} {
  func.func @_dwt1d_kernel(%arg0: i32, %arg1: i32, %arg2: i32, %arg3: memref<2x2xf32, #tpu.memory_space<smem>>, %arg4: memref<2x1x4x8xf32, #tpu.memory_space<vmem>>, %arg5: memref<1x2x4x8xf32, #tpu.memory_space<vmem>>) attributes {dimension_semantics = [#tpu.dimension_semantics<parallel>, #tpu.dimension_semantics<parallel>, #tpu.dimension_semantics<parallel>], iteration_bounds = array<i64: 2, 1, 1>, scalar_prefetch = 0 : i64, scratch_operands = 0 : i64, tpu.core_type = #tpu.core_type<tc>, window_params = [{transform_indices = @transform_0, window_bounds = array<i64: 2, 2>}, {transform_indices = @transform_1, window_bounds = array<i64: 2, 1, 4, 8>}, {transform_indices = @transform_2, window_bounds = array<i64: 1, 2, 4, 8>}]} {
    %c0 = arith.constant 0 : index
    %c0_0 = arith.constant 0 : index
    %c0_1 = arith.constant 0 : index
    %c0_2 = arith.constant 0 : index
    %0 = vector.load %arg4[%c0, %c0_0, %c0_1, %c0_2] : memref<2x1x4x8xf32, #tpu.memory_space<vmem>>, vector<1x1x4x8xf32>
    %1 = vector.shape_cast %0 : vector<1x1x4x8xf32> to vector<4x8xf32>
    %c0_3 = arith.constant 0 : index
    %c0_4 = arith.constant 0 : index
    %2 = memref.load %arg3[%c0_3, %c0_4] : memref<2x2xf32, #tpu.memory_space<smem>>
    %3 = vector.broadcast %2 : f32 to vector<4x8xf32>
    %4 = arith.mulf %3, %1 : vector<4x8xf32>
    %c1 = arith.constant 1 : index
    %c0_5 = arith.constant 0 : index
    %5 = memref.load %arg3[%c1, %c0_5] : memref<2x2xf32, #tpu.memory_space<smem>>
    %6 = vector.broadcast %5 : f32 to vector<4x8xf32>
    %7 = arith.mulf %6, %1 : vector<4x8xf32>
    %c1_6 = arith.constant 1 : index
    %c0_7 = arith.constant 0 : index
    %c0_8 = arith.constant 0 : index
    %c0_9 = arith.constant 0 : index
    %8 = vector.load %arg4[%c1_6, %c0_7, %c0_8, %c0_9] : memref<2x1x4x8xf32, #tpu.memory_space<vmem>>, vector<1x1x4x8xf32>
    %9 = vector.shape_cast %8 : vector<1x1x4x8xf32> to vector<4x8xf32>
    %c0_10 = arith.constant 0 : index
    %c1_11 = arith.constant 1 : index
    %10 = memref.load %arg3[%c0_10, %c1_11] : memref<2x2xf32, #tpu.memory_space<smem>>
    %11 = vector.broadcast %10 : f32 to vector<4x8xf32>
    %12 = arith.mulf %11, %9 : vector<4x8xf32>
    %13 = arith.addf %4, %12 : vector<4x8xf32>
    %c1_12 = arith.constant 1 : index
    %c1_13 = arith.constant 1 : index
    %14 = memref.load %arg3[%c1_12, %c1_13] : memref<2x2xf32, #tpu.memory_space<smem>>
    %15 = vector.broadcast %14 : f32 to vector<4x8xf32>
    %16 = arith.mulf %15, %9 : vector<4x8xf32>
    %17 = arith.addf %7, %16 : vector<4x8xf32>
    %c0_14 = arith.constant 0 : index
    %c0_15 = arith.constant 0 : index
    %c0_16 = arith.constant 0 : index
    %c0_17 = arith.constant 0 : index
    %18 = vector.load %arg5[%c0_14, %c0_15, %c0_16, %c0_17] : memref<1x2x4x8xf32, #tpu.memory_space<vmem>>, vector<1x1x4x8xf32>
    %19 = vector.shape_cast %18 : vector<1x1x4x8xf32> to vector<4x8xf32>
    %20 = vector.shape_cast %13 : vector<4x8xf32> to vector<1x1x4x8xf32>
    tpu.vector_store %arg5[%c0_14, %c0_15, %c0_16, %c0_17], %20 {strides = array<i32>} : memref<1x2x4x8xf32, #tpu.memory_space<vmem>>, vector<1x1x4x8xf32>,
    %c0_18 = arith.constant 0 : index
    %c1_19 = arith.constant 1 : index
    %c0_20 = arith.constant 0 : index
    %c0_21 = arith.constant 0 : index
    %21 = vector.load %arg5[%c0_18, %c1_19, %c0_20, %c0_21] : memref<1x2x4x8xf32, #tpu.memory_space<vmem>>, vector<1x1x4x8xf32>
    %22 = vector.shape_cast %21 : vector<1x1x4x8xf32> to vector<4x8xf32>
    %23 = vector.shape_cast %17 : vector<4x8xf32> to vector<1x1x4x8xf32>
    tpu.vector_store %arg5[%c0_18, %c1_19, %c0_20, %c0_21], %23 {strides = array<i32>} : memref<1x2x4x8xf32, #tpu.memory_space<vmem>>, vector<1x1x4x8xf32>,
    return
  }
  func.func @transform_0(%arg0: i32, %arg1: i32, %arg2: i32) -> (i32, i32) {
    %c0_i32 = arith.constant 0 : i32
    %c0_i32_0 = arith.constant 0 : i32
    %c0_i32_1 = arith.constant 0 : i32
    return %c0_i32, %c0_i32_0 : i32, i32
  }
  func.func @transform_1(%arg0: i32, %arg1: i32, %arg2: i32) -> (i32, i32, i32, i32) {
    %c0_i32 = arith.constant 0 : i32
    %c0_i32_0 = arith.constant 0 : i32
    return %c0_i32, %arg0, %arg1, %arg2 : i32, i32, i32, i32
  }
  func.func @transform_2(%arg0: i32, %arg1: i32, %arg2: i32) -> (i32, i32, i32, i32) {
    %c0_i32 = arith.constant 0 : i32
    %c0_i32_0 = arith.constant 0 : i32
    return %arg0, %c0_i32, %arg1, %arg2 : i32, i32, i32, i32
  }
}

</mosaic_0001>

<bundles_post_ra>
// kernel: tpu_custom_call.1
= control target key start
LH: loop header
LB: loop body
LE: loop exit
PB: predicated region body
PF: predicated region fallthrough
CT: control target
= control target key end

     0   :  { %s751_s0 = inlined_call_operand.hbm [shape: f32[2,2], index: 0, kind: input, shape index: {}]   ;;  %s752_s1 = inlined_call_operand.hbm [shape: f32[2,2,4,8], index: 1, kind: input, shape index: {}]   ;;  %s753_s2 = inlined_call_operand.hbm [shape: f32[2,2,4,8], index: 2, kind: output, shape index: {}]  }
   0x1   :  { %754 = sst [smem:[#allocation11_spill]] %s751_s0 }
   0x2   :  { %7 = vsyncpa [#allocation5], 0 }
   0x3   :  { %8 = vsyncpa [#allocation3], 0 }
   0x4   :  { %10 = vsyncpa [#allocation3 + $0x1], 0 }
   0x5   :  { %11 = vsyncpa [#allocation4], 0 }
   0x6   :  { %13 = vsyncpa [#allocation4 + $0x1], 0  ;;  %s600_s9 = smov 0   ;;  %s602_s10 = smov 0  }
   0x7   :  { %s604_s11 = smov 0   ;;  %s606_s12 = smov 0  }
   0x8   :  { %s608_s13 = smov 0   ;;  %s610_s14 = smov 0  }
   0x9 LB: > { %s346_s15 = sadd.s32 4294967295, %s577_s14   ;;  %s347_s16 = sadd.s32 4294967294, %s577_s14   ;;  %s577_s14 = sphi %s610_s14, %s19_s14   ;;  %s573_s13 = sphi %s608_s13, %s767_s13   ;;  %s569_s12 = sphi %s606_s12, %s766_s12   ;;  %s565_s11 = sphi %s604_s11, %s765_s11   ;;  %s561_s10 = sphi %s602_s10, %s764_s10   ;;  %s557_s9 = sphi %s600_s9, %s763_s9  }
   0xa   : > { %s70_s17 = sadd.s32 1, %s565_s11  ;;  %p77_p0 = scmp.ne.s32.totalorder %s565_s11, %s561_s10 }
   0xb   : > { %p78_p1 = scmp.eq.s32.totalorder %s577_s14, 0  ;;  %p83_p2 = scmp.ne.s32.totalorder %s561_s10, %s557_s9 }
   0xc   : > { %p638_p3 = scmp.eq.s32.totalorder %s346_s15, 0  ;;  %p111_p4 = scmp.eq.s32.totalorder %s346_s15, 1 }
   0xd   : > { %p642_p5 = por %p78_p1, %p77_p0  ;;  %p117_p6 = scmp.eq.s32.totalorder %s347_s16, 1 }
   0xe   : > { %p648_p7 = por %p638_p3, %p83_p2  ;;  %p652_p8 = por %p111_p4, %p77_p0 }
   0xf   : > { %p656_p9 = por %p117_p6, %p83_p2  ;;  %p348_p10 = scmp.ge.s32.totalorder %s577_s14, 1 }
  0x10   : > { %p124_p11 = scmp.lt.s32.totalorder %s577_s14, 3  ;;  %s760_s0 = sld [smem:[#allocation11_spill]] }
  0x11   : > { %p350_p13 = scmp.ge.s32.totalorder %s577_s14, 2  ;;  %p389_p0 = scmp.lt.s32.totalorder %s577_s14, 2 }
  0x12   : > { %p665_p12 = pnand %p348_p10, %p124_p11  ;;  %s38_s28 = sadd.s32 1, %s573_s13 }
  0x13   : > { %p675_p2 = pnand %p389_p0, %p642_p5  ;;  %p40_p6 = scmp.ge.s32.totalorder %s38_s28, 2 }
  0x14   : > { %p376_p1 = pneg %p665_p12  ;;  %s147_s29 = sand.u32 1, %s565_s11  }
  0x15   : > { %s579_s30 = smov [#allocation2]   ;;  %s769_s28 = smov (%p40_p6, %s38_s28), 0 }
  0x16   : > { %s136_s25 = sshll.u32 %s760_s0, 4  ;;  %p377_p4 = pnand %p376_p1, %p638_p3  ;;  %s137_s25 = int_to_ptr.hbm [resolvable:$true] %s136_s25 }
  0x17   : > { %s351_s3 = sshll.u32 %s147_s29, 3  ;;  %s63_s4 = ssub.s32 %s573_s13, %s769_s28 }
  0x18   : > { %379 = dma.hbm_to_smem (!%p377_p4), %s137_s25, 32, %s579_s30, [#allocation5]  }
  0x19   : > { %p68_p10 = scmp.eq.s32.totalorder %s63_s4, 0  ;;  %s352_s5 = sshll.u32 %s573_s13, 2 }
  0x1a   : > { %s157_s8 = scalar_lea.hbm %s752_s1, %s352_s5  ;;  %s151_s15 = scalar_lea.vmem [#allocation6], %s351_s3 }
  0x1b   : > { %s160_s16 = sshll.u32 %s151_s15, 4  ;;  %s158_s23 = sshll.u32 %s157_s8, 4  ;;  %s161_s16 = int_to_ptr.vmem [resolvable:$true] %s160_s16  ;;  %s159_s23 = int_to_ptr.hbm [resolvable:$true] %s158_s23 }
  0x1c   : > { %s694_s19 = scalar_select %p68_p10, %s565_s11, %s70_s17  }
  0x1d   : > { %s148_s24 = scalar_lea.sflag [#allocation3], %s147_s29  ;;  %s580_s25 = smov 128  }
  0x1e   : > { %s581_s30 = smov 64   ;;  %s582_s0 = smov 4  }
  0x1f   : > { %383 = dma.hbm_to_vmem [thread:$0]  (!%p675_p2), %s159_s23, 128, %s161_s16, %s148_s24, %s580_s25, %s581_s30, %s582_s0  }
  0x20   : > { %172 = sbr.rel (%p665_p12) target bundleno = 62 (0x3e), region = 28 }
  0x25   : > { %544 = dma.done.wait (%p638_p3), [#allocation5], 32  }
  0x26   : > { %546 = vsyncadd (%p638_p3), [#allocation5], 4294967264  ;;  %s705_s17 = sand.u32 1, %s561_s10  }
  0x27   : > { %s355_s29 = sshll.u32 %s705_s17, 3  ;;  %s180_s3 = scalar_lea.sflag [#allocation3], %s705_s17 }
  0x28   : > { %s183_s4 = scalar_lea.vmem [#allocation6], %s355_s29 }
  0x29   : > { %548 = dma.done.wait (%p648_p7), %s180_s3, 128  }
  0x2a   : > { %550 = vsyncadd (%p648_p7), %s180_s3, 4294967168 }
  0x2b   : > { %189 = sfence }
  0x2c   : > { %s207_s0 = sld [smem:[#allocation2]]  ;;  %v206_v0 = vld [vmem:[%s183_s4] sm:$0xf]  ;;  %s367_s5 = sshll.u32 %s569_s12, 3  ;;  %v358_v1 = vld [vmem:[%s183_s4 + $0x4] sm:$0xf] }
  0x2d   : > { %s359_s26 = sld [smem:[#allocation2 + $0x1]]  ;;  %s241_s8 = scalar_lea.hbm %s753_s2, %s367_s5  ;;  %vm223_vm0 = vcmask 60416  }
  0x2e   : > { %s357_s18 = sld [smem:[#allocation2 + $0x80]]  ;;  %s205_s15 = scalar_lea.vmem [#allocation7], %s355_s29 }
  0x2f   : > { %s360_s27 = sld [smem:[#allocation2 + $0x81]]  ;;  %s242_s20 = sshll.u32 %s205_s15, 4  ;;  %s243_s20 = int_to_ptr.vmem [resolvable:$true] %s242_s20 }
  0x30   : > { %s244_s16 = sshll.u32 %s241_s8, 4  ;;  %s228_s12 = scalar_lea.sflag [#allocation4], %s705_s17  ;;  %s245_s16 = int_to_ptr.hbm [resolvable:$true] %s244_s16 }
  0x31   : > { %s505_s23 = sshra.s32 %s245_s16, 4  ;;  %s511_s29 = scalar_lea.hbm %s753_s2, 16  ;;  %s506_s23 = int_to_ptr.hbm [resolvable:$true] %s505_s23 }
  0x32   : > { %v208_v2 = vstv %s207_s0  ;;  %s507_s24 = scalar_lea.hbm %s506_s23, 8  ;;  %p512_p11 = scmp.lt.s32.totalorder %s506_s23, %s753_s2 }
  0x33   : > { %v209_v3 = vmul.f32 %v208_v2, %v206_v0  ;;  %v216_v4 = vstv %s359_s26  ;;  %p508_p3 = scmp.ne.s32.totalorder %s506_s23, %s507_s24  ;;  %p513_p12 = scmp.lt.s32.totalorder %s511_s29, %s507_s24 }
  0x34   : > { %v217_v5 = vmul.f32 %v358_v1, %v216_v4  ;;  %v211_v6 = vstv %s357_s18 }
  0x35   : > { %v212_v7 = vmul.f32 %v211_v6, %v206_v0  ;;  %v220_v8 = vstv %s360_s27  ;;  %p509_p5 = pnand %p508_p3, %p652_p8  ;;  %p514_p0 = por %p513_p12, %p512_p11 }
  0x36   : > { %v218_v9 = vadd.f32 %v217_v5, %v209_v3  ;;  %v221_v10 = vmul.f32 %v358_v1, %v220_v8 }
  0x37   : > { %p510_p7 = pneg %p509_p5 }
  0x38   : > { %224 = vst.msk [vmem:[%s205_s15] sm:$0xf] %vm223_vm0, %v218_v9  ;;  %v222_v11 = vadd.f32 %v221_v10, %v212_v7 }
  0x39   : > { %p515_p1 = pnand %p514_p0, %p510_p7 }
  0x3a   : > { %361 = vst.msk [vmem:[%s205_s15 + $0x4] sm:$0xf] %vm223_vm0, %v222_v11 }
  0x3b   : > { %518 = shalt.err (!%p515_p1)
}
  0x3c   : > { %s583_s17 = smov 64   ;;  %s584_s0 = smov 4  }
  0x3d   : > { %374 = dma.vmem_to_hbm [thread:$0]  (%p652_p8), %s243_s20, 128, %s245_s16, %s228_s12, %s583_s17, %s583_s17, %s584_s0  }
  0x3e PF: > { %s259_s26 = sand.u32 1, %s557_s9   ;;  %p385_p2 = pnand %p350_p13, %p656_p9 }
  0x3f   : > { %s260_s18 = scalar_lea.sflag [#allocation4], %s259_s26 }
  0x40   : > { %p386_p4 = pneg %p385_p2 }
  0x42   : > { %552 = dma.done.wait (%p386_p4), %s260_s18, 128  }
  0x43   : > { %554 = vsyncadd (%p386_p4), %s260_s18, 4294967168  ;;  %s19_s14 = sadd.s32 1, %s577_s14   ;;  %s763_s9 = smov %s561_s10 }
  0x44   : > { %p16_p6 = scmp.ge.s32.totalorder %s19_s14, 4   ;;  %s764_s10 = smov %s565_s11 }
  0x45   : > { %s765_s11 = smov %s694_s19  ;;  %s766_s12 = smov %s573_s13 }
  0x46   : > { %s767_s13 = smov %s769_s28  ;;  %18 = sbr.rel (!%p16_p6) target bundleno = 9 (0x9), region = 80 }
  0x4b   :  { %266 = vsyncpa [#allocation3], 1 }
  0x4c   :  { %268 = vsyncpa [#allocation3 + $0x1], 1 }
  0x4d   :  { %269 = vsyncpa [#allocation4], 1 }
  0x4e   :  { %271 = vsyncpa [#allocation4 + $0x1], 1 }
  0x4f   :  { %272 = vsyncpa [#allocation5], 1 }
  0x50   :  { %274 = vsyncpa [#allocation5 + $0x1], 1 }

</bundles_post_ra>
